<compile_context>
chip_gen: v5e
topology: v5e:2x2
jax: 0.10.0
libtpu: 0.0.40
codegen_flags: <defaults>
</compile_context>

<pallas_src>
import jax
import jax.numpy as jnp
import numpy as np
from jax.experimental import pallas as pl
from jax.experimental.pallas import tpu as pltpu

# ---------------- config (small, consistent with the module) ----------------
B, C1, H, W = 2, 4, 16, 16       # input  (NCHW)
C2 = 8                           # output channels
K, S, P, D = 3, 1, 1, 1          # kernel, stride, autopad(3)=1, dilation
E = 4                            # num_experts
HID = max(C1 // 16, 1)           # attention bottleneck
HW = H * W
CKK = C1 * K * K
EPS = 1e-5                       # BatchNorm2d eps


# ------------------------------ Pallas kernel --------------------------------
def dyconv_fused_kernel(wmix_ref, patches_ref, gamma_ref, beta_ref, out_ref):
    """Fused DyConv: premixed conv matmul (one MXU matmul/batch) + BN + SiLU.

    w_mix   : VMEM (B, C2, CKK)  attention-premixed im2col weights
    patches : VMEM (B, CKK, HW)  im2col patches, HW on the lane axis
    gamma   : VMEM (C2, 1)
    beta    : VMEM (C2, 1)
    out     : VMEM (B, C2, HW)   lane-dense output
    """
    ys = []
    s = None
    sq = None
    # --- per-batch conv matmul; accumulate BN sums in the same pass ---
    for b in range(B):                                     # B=2, static unroll
        # (C2, CKK) @ (CKK, HW) -> (C2, HW): lane-dense accumulator
        y = jnp.dot(wmix_ref[b], patches_ref[b],
                    preferred_element_type=jnp.float32)
        ys.append(y)
        sb = y.sum(axis=1, keepdims=True)                  # (C2, 1) XLU reduce
        sqb = (y * y).sum(axis=1, keepdims=True)           # (C2, 1)
        s = sb if s is None else s + sb
        sq = sqb if sq is None else sq + sqb

    # --- BatchNorm2d training-mode stats over (N, H, W), per channel ---
    # One-pass: var = E[y^2] - mean^2 (cancellation negligible at this scale).
    n = float(B * HW)
    mean = s / n                                           # (C2, 1)
    var = sq / n - mean * mean                             # (C2, 1)
    inv = jax.lax.rsqrt(var + EPS)                         # EUP rsqrt
    scale = inv * gamma_ref[...]                           # (C2, 1)
    shift = beta_ref[...] - mean * scale                   # (C2, 1)

    # --- normalize + SiLU (tanh form: one EUP push), lane-dense stores ---
    for b in range(B):
        z = ys[b] * scale + shift                          # (C2, HW)
        out_ref[b] = 0.5 * z * (1.0 + jnp.tanh(0.5 * z))


# --------------------------------- wrapper -----------------------------------
@jax.jit
def dyconv_forward(x_nchw, expert_w, w1, w2, gamma, beta):
    # --- attention branch (tiny: global avg pool + two 1x1 convs + softmax) ---
    pooled = jnp.mean(x_nchw, axis=(2, 3))                 # (B, C1)
    hidden = jax.nn.relu(pooled @ w1.T)                    # (B, HID)
    attn = jax.nn.softmax(hidden @ w2.T, axis=1)           # (B, E)

    # --- im2col directly from NCHW: no transposes of the big patches tensor ---
    xp = jnp.pad(x_nchw, ((0, 0), (0, 0), (P, P), (P, P)))
    cols = []
    for dy in range(K):
        for dx in range(K):
            cols.append(xp[:, :, dy:dy + H, dx:dx + W])    # (B, C1, H, W)
    # concat on channel axis -> row order (dy, dx, ci); HW already last
    patches = jnp.concatenate(cols, axis=1).reshape(B, CKK, HW)

    # expert weights (E, C2, C1, K, K) -> (E, C2, K, K, C1) -> (E, C2, CKK)
    w_mat = jnp.transpose(expert_w, (0, 1, 3, 4, 2)).reshape(E, C2, CKK)
    # premix with attention in the jitted wrapper (tiny, XLA fuses it for free)
    w_mix = jnp.einsum("be,eck->bck", attn, w_mat)         # (B, C2, CKK)

    # --- single fused Pallas kernel: conv-matmul + BN + SiLU ---
    out = pl.pallas_call(
        dyconv_fused_kernel,
        out_shape=jax.ShapeDtypeStruct((B, C2, HW), jnp.float32),
        grid=(1,),
        in_specs=[
            pl.BlockSpec((B, C2, CKK), lambda i: (0, 0, 0)),   # premixed weights
            pl.BlockSpec((B, CKK, HW), lambda i: (0, 0, 0)),   # patches
            pl.BlockSpec((C2, 1), lambda i: (0, 0)),           # gamma
            pl.BlockSpec((C2, 1), lambda i: (0, 0)),           # beta
        ],
        out_specs=pl.BlockSpec((B, C2, HW), lambda i: (0, 0, 0)),
    )(w_mix, patches, gamma.reshape(C2, 1), beta.reshape(C2, 1))

    # (B, C2, HW) -> NCHW
    return out.reshape(B, C2, H, W)


# --------------------------- pure-JAX reference ------------------------------
def reference(x, expert_w, w1, w2, gamma, beta):
    pooled = jnp.mean(x, axis=(2, 3))
    attn = jax.nn.softmax(jax.nn.relu(pooled @ w1.T) @ w2.T, axis=1)
    out = jnp.zeros((B, C2, H, W), jnp.float32)
    for e in range(E):
        conv = jax.lax.conv_general_dilated(
            x, expert_w[e], (S, S), ((P, P), (P, P)),
            dimension_numbers=("NCHW", "OIHW", "NCHW"))
        out = out + attn[:, e][:, None, None, None] * conv
    mean = jnp.mean(out, axis=(0, 2, 3), keepdims=True)
    var = jnp.mean((out - mean) ** 2, axis=(0, 2, 3), keepdims=True)
    z = ((out - mean) / jnp.sqrt(var + EPS)
         * gamma[None, :, None, None] + beta[None, :, None, None])
    return z * jax.nn.sigmoid(z)


# ----------------------------------- main -------------------------------------
if __name__ == "__main__":
    key = jax.random.PRNGKey(0)
    k1, k2, k3, k4 = jax.random.split(key, 4)
    x = jax.random.normal(k1, (B, C1, H, W), jnp.float32)
    expert_w = jax.random.normal(k2, (E, C2, C1, K, K), jnp.float32) * 0.1
    w1 = jax.random.normal(k3, (HID, C1), jnp.float32) * 0.5     # 1x1 conv weight
    w2 = jax.random.normal(k4, (E, HID), jnp.float32) * 0.5      # 1x1 conv weight
    gamma = jnp.ones((C2,), jnp.float32)                         # BN default init
    beta = jnp.zeros((C2,), jnp.float32)

    out = jax.block_until_ready(dyconv_forward(x, expert_w, w1, w2, gamma, beta))
    ref = jax.block_until_ready(reference(x, expert_w, w1, w2, gamma, beta))
    assert out.shape == (B, C2, H, W)
    np.testing.assert_allclose(np.asarray(out), np.asarray(ref),
                               atol=2e-3, rtol=2e-3)
    print("KERNEL_OK")
</pallas_src>

<mosaic_0001>
module attributes {stable_mosaic.version = 11 : i64} {
  func.func @dyconv_fused_kernel(%arg0: i32, %arg1: memref<2x8x36xf32, #tpu.memory_space<vmem>>, %arg2: memref<2x36x256xf32, #tpu.memory_space<vmem>>, %arg3: memref<8x1xf32, #tpu.memory_space<vmem>>, %arg4: memref<8x1xf32, #tpu.memory_space<vmem>>, %arg5: memref<2x8x256xf32, #tpu.memory_space<vmem>>) attributes {dimension_semantics = [#tpu.dimension_semantics<arbitrary>], iteration_bounds = array<i64: 1>, scalar_prefetch = 0 : i64, scratch_operands = 0 : i64, tpu.core_type = #tpu.core_type<tc>, window_params = [{pipeline_mode = #tpu.pipeline_mode<synchronous>, transform_indices = @transform_0, window_bounds = array<i64: 2, 8, 36>}, {pipeline_mode = #tpu.pipeline_mode<synchronous>, transform_indices = @transform_1, window_bounds = array<i64: 2, 36, 256>}, {pipeline_mode = #tpu.pipeline_mode<synchronous>, transform_indices = @transform_2, window_bounds = array<i64: 8, 1>}, {pipeline_mode = #tpu.pipeline_mode<synchronous>, transform_indices = @transform_3, window_bounds = array<i64: 8, 1>}, {pipeline_mode = #tpu.pipeline_mode<synchronous>, transform_indices = @transform_4, window_bounds = array<i64: 2, 8, 256>}]} {
    %c0 = arith.constant 0 : index
    %c0_0 = arith.constant 0 : index
    %c0_1 = arith.constant 0 : index
    %0 = vector.load %arg1[%c0, %c0_0, %c0_1] : memref<2x8x36xf32, #tpu.memory_space<vmem>>, vector<1x8x36xf32>
    %1 = vector.shape_cast %0 : vector<1x8x36xf32> to vector<8x36xf32>
    %c0_2 = arith.constant 0 : index
    %c0_3 = arith.constant 0 : index
    %c0_4 = arith.constant 0 : index
    %2 = vector.load %arg2[%c0_2, %c0_3, %c0_4] : memref<2x36x256xf32, #tpu.memory_space<vmem>>, vector<1x36x256xf32>
    %3 = vector.shape_cast %2 : vector<1x36x256xf32> to vector<36x256xf32>
    %cst = arith.constant dense<0.000000e+00> : vector<8x256xf32>
    %4 = tpu.matmul %1, %3, %cst {dimension_numbers = #tpu.dot_dimension_numbers<[1], [0], [0], [1], [0, 0, 1, 1], [], []>} : vector<8x36xf32>, vector<36x256xf32>, vector<8x256xf32> -> vector<8x256xf32>
    %cst_5 = arith.constant dense<0.000000e+00> : vector<8xf32>
    %5 = vector.multi_reduction <add>, %4, %cst_5 [1] : vector<8x256xf32> to vector<8xf32>
    %6 = vector.shape_cast %5 : vector<8xf32> to vector<8x1xf32>
    %7 = arith.mulf %4, %4 : vector<8x256xf32>
    %cst_6 = arith.constant dense<0.000000e+00> : vector<8xf32>
    %8 = vector.multi_reduction <add>, %7, %cst_6 [1] : vector<8x256xf32> to vector<8xf32>
    %9 = vector.shape_cast %8 : vector<8xf32> to vector<8x1xf32>
    %c1 = arith.constant 1 : index
    %c0_7 = arith.constant 0 : index
    %c0_8 = arith.constant 0 : index
    %10 = vector.load %arg1[%c1, %c0_7, %c0_8] : memref<2x8x36xf32, #tpu.memory_space<vmem>>, vector<1x8x36xf32>
    %11 = vector.shape_cast %10 : vector<1x8x36xf32> to vector<8x36xf32>
    %c1_9 = arith.constant 1 : index
    %c0_10 = arith.constant 0 : index
    %c0_11 = arith.constant 0 : index
    %12 = vector.load %arg2[%c1_9, %c0_10, %c0_11] : memref<2x36x256xf32, #tpu.memory_space<vmem>>, vector<1x36x256xf32>
    %13 = vector.shape_cast %12 : vector<1x36x256xf32> to vector<36x256xf32>
    %cst_12 = arith.constant dense<0.000000e+00> : vector<8x256xf32>
    %14 = tpu.matmul %11, %13, %cst_12 {dimension_numbers = #tpu.dot_dimension_numbers<[1], [0], [0], [1], [0, 0, 1, 1], [], []>} : vector<8x36xf32>, vector<36x256xf32>, vector<8x256xf32> -> vector<8x256xf32>
    %cst_13 = arith.constant dense<0.000000e+00> : vector<8xf32>
    %15 = vector.multi_reduction <add>, %14, %cst_13 [1] : vector<8x256xf32> to vector<8xf32>
    %16 = vector.shape_cast %15 : vector<8xf32> to vector<8x1xf32>
    %17 = arith.mulf %14, %14 : vector<8x256xf32>
    %cst_14 = arith.constant dense<0.000000e+00> : vector<8xf32>
    %18 = vector.multi_reduction <add>, %17, %cst_14 [1] : vector<8x256xf32> to vector<8xf32>
    %19 = vector.shape_cast %18 : vector<8xf32> to vector<8x1xf32>
    %20 = arith.addf %6, %16 : vector<8x1xf32>
    %21 = arith.addf %9, %19 : vector<8x1xf32>
    %cst_15 = arith.constant 5.120000e+02 : f32
    %22 = vector.broadcast %cst_15 : f32 to vector<8x1xf32>
    %23 = arith.divf %20, %22 : vector<8x1xf32>
    %cst_16 = arith.constant 5.120000e+02 : f32
    %24 = vector.broadcast %cst_16 : f32 to vector<8x1xf32>
    %25 = arith.divf %21, %24 : vector<8x1xf32>
    %26 = arith.mulf %23, %23 : vector<8x1xf32>
    %27 = arith.subf %25, %26 : vector<8x1xf32>
    %cst_17 = arith.constant 9.99999974E-6 : f32
    %28 = vector.broadcast %cst_17 : f32 to vector<8x1xf32>
    %29 = arith.addf %27, %28 : vector<8x1xf32>
    %30 = math.rsqrt %29 : vector<8x1xf32>
    %c0_18 = arith.constant 0 : index
    %c0_19 = arith.constant 0 : index
    %31 = vector.load %arg3[%c0_18, %c0_19] : memref<8x1xf32, #tpu.memory_space<vmem>>, vector<8x1xf32>
    %32 = arith.mulf %30, %31 : vector<8x1xf32>
    %c0_20 = arith.constant 0 : index
    %c0_21 = arith.constant 0 : index
    %33 = vector.load %arg4[%c0_20, %c0_21] : memref<8x1xf32, #tpu.memory_space<vmem>>, vector<8x1xf32>
    %34 = arith.mulf %23, %32 : vector<8x1xf32>
    %35 = arith.subf %33, %34 : vector<8x1xf32>
    %36 = vector.broadcast %32 : vector<8x1xf32> to vector<8x256xf32>
    %37 = arith.mulf %4, %36 : vector<8x256xf32>
    %38 = vector.broadcast %35 : vector<8x1xf32> to vector<8x256xf32>
    %39 = arith.addf %37, %38 : vector<8x256xf32>
    %cst_22 = arith.constant 5.000000e-01 : f32
    %40 = vector.broadcast %cst_22 : f32 to vector<8x256xf32>
    %41 = arith.mulf %40, %39 : vector<8x256xf32>
    %cst_23 = arith.constant 5.000000e-01 : f32
    %42 = vector.broadcast %cst_23 : f32 to vector<8x256xf32>
    %43 = arith.mulf %42, %39 : vector<8x256xf32>
    %44 = math.tanh %43 : vector<8x256xf32>
    %cst_24 = arith.constant 1.000000e+00 : f32
    %45 = vector.broadcast %cst_24 : f32 to vector<8x256xf32>
    %46 = arith.addf %45, %44 : vector<8x256xf32>
    %47 = arith.mulf %41, %46 : vector<8x256xf32>
    %c0_25 = arith.constant 0 : index
    %c0_26 = arith.constant 0 : index
    %c0_27 = arith.constant 0 : index
    %48 = vector.load %arg5[%c0_25, %c0_26, %c0_27] : memref<2x8x256xf32, #tpu.memory_space<vmem>>, vector<1x8x256xf32>
    %49 = vector.shape_cast %48 : vector<1x8x256xf32> to vector<8x256xf32>
    %50 = vector.shape_cast %47 : vector<8x256xf32> to vector<1x8x256xf32>
    tpu.vector_store %arg5[%c0_25, %c0_26, %c0_27], %50 {strides = array<i32>} : memref<2x8x256xf32, #tpu.memory_space<vmem>>, vector<1x8x256xf32>,
    %51 = vector.broadcast %32 : vector<8x1xf32> to vector<8x256xf32>
    %52 = arith.mulf %14, %51 : vector<8x256xf32>
    %53 = vector.broadcast %35 : vector<8x1xf32> to vector<8x256xf32>
    %54 = arith.addf %52, %53 : vector<8x256xf32>
    %cst_28 = arith.constant 5.000000e-01 : f32
    %55 = vector.broadcast %cst_28 : f32 to vector<8x256xf32>
    %56 = arith.mulf %55, %54 : vector<8x256xf32>
    %cst_29 = arith.constant 5.000000e-01 : f32
    %57 = vector.broadcast %cst_29 : f32 to vector<8x256xf32>
    %58 = arith.mulf %57, %54 : vector<8x256xf32>
    %59 = math.tanh %58 : vector<8x256xf32>
    %cst_30 = arith.constant 1.000000e+00 : f32
    %60 = vector.broadcast %cst_30 : f32 to vector<8x256xf32>
    %61 = arith.addf %60, %59 : vector<8x256xf32>
    %62 = arith.mulf %56, %61 : vector<8x256xf32>
    %c1_31 = arith.constant 1 : index
    %c0_32 = arith.constant 0 : index
    %c0_33 = arith.constant 0 : index
    %63 = vector.load %arg5[%c1_31, %c0_32, %c0_33] : memref<2x8x256xf32, #tpu.memory_space<vmem>>, vector<1x8x256xf32>
    %64 = vector.shape_cast %63 : vector<1x8x256xf32> to vector<8x256xf32>
    %65 = vector.shape_cast %62 : vector<8x256xf32> to vector<1x8x256xf32>
    tpu.vector_store %arg5[%c1_31, %c0_32, %c0_33], %65 {strides = array<i32>} : memref<2x8x256xf32, #tpu.memory_space<vmem>>, vector<1x8x256xf32>,
    return
  }
  func.func @transform_0(%arg0: i32) -> (i32, i32, i32) {
    %c0_i32 = arith.constant 0 : i32
    %c0_i32_0 = arith.constant 0 : i32
    %c0_i32_1 = arith.constant 0 : i32
    %c0_i32_2 = arith.constant 0 : i32
    return %c0_i32, %c0_i32_0, %c0_i32_1 : i32, i32, i32
  }
  func.func @transform_1(%arg0: i32) -> (i32, i32, i32) {
    %c0_i32 = arith.constant 0 : i32
    %c0_i32_0 = arith.constant 0 : i32
    %c0_i32_1 = arith.constant 0 : i32
    %c0_i32_2 = arith.constant 0 : i32
    return %c0_i32, %c0_i32_0, %c0_i32_1 : i32, i32, i32
  }
  func.func @transform_2(%arg0: i32) -> (i32, i32) {
    %c0_i32 = arith.constant 0 : i32
    %c0_i32_0 = arith.constant 0 : i32
    %c0_i32_1 = arith.constant 0 : i32
    return %c0_i32, %c0_i32_0 : i32, i32
  }
  func.func @transform_3(%arg0: i32) -> (i32, i32) {
    %c0_i32 = arith.constant 0 : i32
    %c0_i32_0 = arith.constant 0 : i32
    %c0_i32_1 = arith.constant 0 : i32
    return %c0_i32, %c0_i32_0 : i32, i32
  }
  func.func @transform_4(%arg0: i32) -> (i32, i32, i32) {
    %c0_i32 = arith.constant 0 : i32
    %c0_i32_0 = arith.constant 0 : i32
    %c0_i32_1 = arith.constant 0 : i32
    %c0_i32_2 = arith.constant 0 : i32
    return %c0_i32, %c0_i32_0, %c0_i32_1 : i32, i32, i32
  }
}

</mosaic_0001>

<bundles_post_ra>
// kernel: dyconv_forward.1
= control target key start
LH: loop header
LB: loop body
LE: loop exit
PB: predicated region body
PF: predicated region fallthrough
CT: control target
= control target key end

     0   :  { %vm32_vm0 = vcmask 1043456   ;;  %vm28_vm1 = vcmask 293888   ;;  %v266_v34 = vmov 512.0   ;;  %v267_v37 = vmov 0   ;;  %s377_s1 = inlined_call_operand.vmem [shape: f32[2,36,256], index: 1, kind: input, shape index: {}]   ;;  %s378_s0 = inlined_call_operand.vmem [shape: f32[2,8,36], index: 0, kind: input, shape index: {}]   ;;  %s379_s2 = inlined_call_operand.vmem [shape: f32[8,1], index: 2, kind: input, shape index: {}]   ;;  %s380_s3 = inlined_call_operand.vmem [shape: f32[8,1], index: 3, kind: input, shape index: {}]   ;;  %s381_s4 = inlined_call_operand.vmem [shape: f32[2,8,256], index: 4, kind: output, shape index: {}]  }
   0x1   :  { %v26_v0 = vld [vmem:[%s377_s1 + $0x40] sm:$0xf]  ;;  %v27_v1 = vld [vmem:[%s377_s1 + $0x48] sm:$0xf]  ;;  %v24_v2 = vld [vmem:[%s377_s1 + $0x30] sm:$0xff]  ;;  %254 = vrcp.f32 %v266_v34  ;;  %252 = vset.pattern.permute.xlu2 %v267_v37  ;;  %253 = vset.pattern.permute.xlu0 %v267_v37 }
   0x2   :  { %229 = vmatpush.msk.msra.mxu0 %vm32_vm0, %v26_v0  ;;  %231 = vmatpush.msk.msra.mxu1 %vm32_vm0, %v27_v1  ;;  %v25_v3 = vld [vmem:[%s377_s1 + $0x38] sm:$0xff]  ;;  %v242_v4 = vld [vmem:[%s377_s1 + $0x90] sm:$0xf]  ;;  %v22_v6 = vld [vmem:[%s377_s1 + $0x20] sm:$0xff] }
   0x3   :  { %v243_v5 = vld [vmem:[%s377_s1 + $0x98] sm:$0xf]  ;;  %244 = vmatpush.msk.msra.mxu2 %vm32_vm0, %v242_v4  ;;  %v23_v7 = vld [vmem:[%s377_s1 + $0x28] sm:$0xff]  ;;  %v240_v8 = vld [vmem:[%s377_s1 + $0x80] sm:$0xff] }
   0x4   :  { %246 = vmatpush.msk.msra.mxu3 %vm32_vm0, %v243_v5  ;;  %51 = vmatpush.msra.mxu0 %v24_v2  ;;  %v241_v9 = vld [vmem:[%s377_s1 + $0x88] sm:$0xff]  ;;  %v20_v10 = vld [vmem:[%s377_s1 + $0x10] sm:$0xff]  ;;  %v21_v11 = vld [vmem:[%s377_s1 + $0x18] sm:$0xff] }
   0x5   :  { %71 = vmatpush.msra.mxu1 %v25_v3  ;;  %121 = vmatpush.msra.mxu2 %v240_v8  ;;  %v238_v12 = vld [vmem:[%s377_s1 + $0x70] sm:$0xff]  ;;  %v239_v13 = vld [vmem:[%s377_s1 + $0x78] sm:$0xff]  ;;  %v236_v14 = vld [vmem:[%s377_s1 + $0x60] sm:$0xff] }
   0x6   :  { %141 = vmatpush.msra.mxu3 %v241_v9  ;;  %52 = vmatpush.msra.mxu0 %v22_v6  ;;  %v237_v15 = vld [vmem:[%s377_s1 + $0x68] sm:$0xff]  ;;  %v18_v16 = vld [vmem:[%s377_s1] sm:$0xff]  ;;  %v234_v19 = vld [vmem:[%s377_s1 + $0x50] sm:$0xff] }
   0x7   :  { %72 = vmatpush.msra.mxu1 %v23_v7  ;;  %122 = vmatpush.msra.mxu2 %v238_v12  ;;  %v19_v17 = vld [vmem:[%s377_s1 + $0x8] sm:$0xff]  ;;  %v17_v18 = vld [vmem:[%s378_s0] sm:$0xff]  ;;  %v235_v20 = vld [vmem:[%s377_s1 + $0x58] sm:$0xff]  ;;  %v255_v35 = vpop.eup %254 }
   0x8   :  { %142 = vmatpush.msra.mxu3 %v239_v13  ;;  %53 = vmatpush.msra.mxu0 %v20_v10  ;;  %v233_v21 = vld [vmem:[%s378_s0 + $0x8] sm:$0xff]  ;;  %v160_v36 = vmul.f32 512.0, %v255_v35  ;;  %vm164_vm2 = vweird.f32 %v255_v35  ;;  %v181_v59 = vld [vmem:[%s379_s2] sm:$0xff] }
   0x9   :  { %73 = vmatpush.msra.mxu1 %v21_v11  ;;  %123 = vmatpush.msra.mxu2 %v236_v14  ;;  %v183_v63 = vld [vmem:[%s380_s3] sm:$0xff] }
   0xa   :  { %143 = vmatpush.msra.mxu3 %v237_v15  ;;  %54 = vmatpush.msra.mxu0 %v18_v16  ;;  %v161_v38 = vsub.f32 1.0, %v160_v36 }
   0xb   :  { %74 = vmatpush.msra.mxu1 %v19_v17  ;;  %230 = vmatmul.msk.f32.vlgmr.msra.gmra.mxu0 %vm28_vm1, %v17_v18 }
   0xc   :  { %232 = vmatmul.msk.f32.vlgmr.msra.gmra.mxu1 %vm28_vm1, %v17_v18  ;;  %124 = vmatpush.msra.mxu2 %v234_v19  ;;  %v162_v40 = vmul.f32 %v255_v35, %v161_v38 }
   0xd   :  { %144 = vmatpush.msra.mxu3 %v235_v20  ;;  %245 = vmatmul.msk.f32.vlgmr.msra.gmra.mxu2 %vm28_vm1, %v233_v21 }
   0xe   :  { %247 = vmatmul.msk.f32.vlgmr.msra.gmra.mxu3 %vm28_vm1, %v233_v21  ;;  %v163_v42 = vadd.f32 %v255_v35, %v162_v40 }
  0x10   :  { %v165_v43 = vsel %vm164_vm2, %v255_v35, %v163_v42 }
  0x88   :  { %v56_v22 = vpop.f32.mrf.mxu0 }
  0x89   :  { %v76_v23 = vpop.f32.mrf.mxu1  ;;  %v82_v24 = vmul.f32 %v56_v22, %v56_v22 }
  0x8a   :  { %v83_v25 = vmul.f32 %v76_v23, %v76_v23  ;;  %v79_v26 = vadd.f32 %v76_v23, %v56_v22 }
  0x8c   :  { %80 = vadd.xlane.f32.xlu0 %v79_v26  ;;  %v84_v27 = vadd.f32 %v83_v25, %v82_v24 }
  0x8e   :  { %85 = vadd.xlane.f32.xlu1 %v84_v27 }
  0x90   :  { %v126_v28 = vpop.f32.mrf.mxu2 }
  0x91   :  { %v146_v29 = vpop.f32.mrf.mxu3  ;;  %v152_v30 = vmul.f32 %v126_v28, %v126_v28 }
  0x92   :  { %v153_v31 = vmul.f32 %v146_v29, %v146_v29  ;;  %v149_v32 = vadd.f32 %v146_v29, %v126_v28 }
  0x94   :  { %150 = vadd.xlane.f32.xlu0 %v149_v32  ;;  %v154_v33 = vadd.f32 %v153_v31, %v152_v30 }
  0x96   :  { %155 = vadd.xlane.f32.xlu1 %v154_v33 }
  0xff   :  { %v81_v39 = vpop.xlane.xlu0 %80 }
 0x101   :  { %v86_v41 = vpop.xlane.xlu1 %85 }
 0x107   :  { %v151_v44 = vpop.xlane.xlu0 %150 }
 0x108   :  { %v157_v45 = vadd.f32 %v151_v44, %v81_v39 }
 0x109   :  { %v156_v46 = vpop.xlane.xlu1 %155 }
 0x10a   :  { %v166_v47 = vmul.f32 %v165_v43, %v157_v45  ;;  %v158_v48 = vadd.f32 %v156_v46, %v86_v41 }
 0x10c   :  { %v168_v49 = vmul.f32 %v166_v47, %v166_v47  ;;  %v167_v50 = vmul.f32 %v165_v43, %v158_v48 }
 0x10e   :  { %v169_v51 = vsub.f32 %v167_v50, %v168_v49 }
 0x110   :  { %v170_v52 = vadd.f32 1e-05, %v169_v51 }
 0x112   :  { %256 = vrsqrt.f32 %v170_v52  ;;  %vm177_vm4 = vweird.f32 %v170_v52 }
 0x118   :  { %v257_v53 = vpop.eup %256 }
 0x119   :  { %v172_v54 = vmul.f32 %v257_v53, %v170_v52  ;;  %vm178_vm3 = vweird.f32 %v257_v53 }
 0x11a   :  { %vm179_vm5 = vmor %vm177_vm4, %vm178_vm3 }
 0x11b   :  { %v173_v55 = vmul.f32 %v257_v53, %v172_v54 }
 0x11d   :  { %v174_v56 = vmul.f32 0.5, %v173_v55 }
 0x11f   :  { %v175_v57 = vsub.f32 1.5, %v174_v56 }
 0x121   :  { %v176_v58 = vmul.f32 %v257_v53, %v175_v57 }
 0x123   :  { %v180_v60 = vsel %vm179_vm5, %v257_v53, %v176_v58 }
 0x124   :  { %v182_v61 = vmul.f32 %v181_v59, %v180_v60 }
 0x126   :  { %188 = vperm.xlu2 %252, %v182_v61   ;;  %v184_v62 = vmul.f32 %v182_v61, %v166_v47 }
 0x128   :  { %v185_v0 = vsub.f32 %v183_v63, %v184_v62 }
 0x12e   :  { %195 = vperm.xlu2 %252, %v185_v0  }
 0x180   :  { %v189_v1 = vpop.permute.xlu2 %188 }
 0x181   :  { %v191_v2 = vmul.f32 %v189_v1, %v56_v22  ;;  %v192_v3 = vmul.f32 %v189_v1, %v76_v23  ;;  %v210_v4 = vmul.f32 %v189_v1, %v126_v28  ;;  %v211_v5 = vmul.f32 %v189_v1, %v146_v29 }
 0x188   :  { %v196_v6 = vpop.permute.xlu2 %195 }
 0x189   :  { %v198_v7 = vadd.f32 %v196_v6, %v191_v2  ;;  %v199_v8 = vadd.f32 %v196_v6, %v192_v3  ;;  %v212_v9 = vadd.f32 %v210_v4, %v196_v6  ;;  %v213_v10 = vadd.f32 %v211_v5, %v196_v6 }
 0x18b   :  { %v200_v11 = vmul.f32 0.5, %v198_v7  ;;  %v201_v12 = vmul.f32 0.5, %v199_v8  ;;  %v214_v13 = vmul.f32 0.5, %v212_v9  ;;  %v215_v14 = vmul.f32 0.5, %v213_v10 }
 0x18d   :  { %258 = vtanh.f32 %v200_v11 }
 0x18e   :  { %260 = vtanh.f32 %v201_v12 }
 0x18f   :  { %262 = vtanh.f32 %v214_v13 }
 0x190   :  { %264 = vtanh.f32 %v215_v14 }
 0x193   :  { %v259_v15 = vpop.eup %258 }
 0x194   :  { %v261_v16 = vpop.eup %260  ;;  %v204_v17 = vadd.f32 1.0, %v259_v15 }
 0x195   :  { %v263_v18 = vpop.eup %262  ;;  %v205_v19 = vadd.f32 1.0, %v261_v16 }
 0x196   :  { %v265_v20 = vpop.eup %264  ;;  %v206_v21 = vmul.f32 %v204_v17, %v200_v11  ;;  %v218_v22 = vadd.f32 1.0, %v263_v18 }
 0x197   :  { %v207_v23 = vmul.f32 %v205_v19, %v201_v12  ;;  %v219_v24 = vadd.f32 1.0, %v265_v20 }
 0x198   :  { %208 = vst [vmem:[%s381_s4] sm:$0xff] %v206_v21  ;;  %v220_v25 = vmul.f32 %v218_v22, %v214_v13 }
 0x199   :  { %209 = vst [vmem:[%s381_s4 + $0x8] sm:$0xff] %v207_v23  ;;  %v221_v26 = vmul.f32 %v219_v24, %v215_v14 }
 0x19a   :  { %248 = vst [vmem:[%s381_s4 + $0x10] sm:$0xff] %v220_v25 }
 0x19b   :  { %249 = vst [vmem:[%s381_s4 + $0x18] sm:$0xff] %v221_v26 }

</bundles_post_ra>
